<compile_context>
chip_gen: v5e
topology: v5e:2x2
jax: 0.10.0
libtpu: 0.0.40
codegen_flags: <defaults>
</compile_context>

<pallas_src>
import functools

import jax
import jax.numpy as jnp
from jax import lax
from jax.experimental import pallas as pl
from jax.experimental.pallas import tpu as pltpu

_LANES = 128
_CHUNK = 8          # sublanes of batch processed per inner-loop step (1 vreg)


def _emd_loss_kernel(x_ref, y_ref, out_ref, *, dist_r, use_l1loss,
                     coff_const, chunk, n_chunks, unroll):
    """One batch tile. x_ref / y_ref are lane-dense (C, R, 128) blocks."""
    C = x_ref.shape[0]
    L = x_ref.shape[2]
    inv_c = 1.0 / float(C)

    def chunk_body(ci, psum):
        r0 = pl.multiple_of(ci * chunk, chunk)
        zero = jnp.zeros((chunk, L), jnp.float32)
        run = zero        # running cumsum of (y - x) over bins == cdf_y-cdf_x
        acc = zero        # sum_c |cdf_diff_c| ** dist_r
        y_sq = zero       # sum_c y_c^2                     (for coff)
        x_ws = zero       # sum_c x_c * (c+1)               (l1 term)
        y_ws = zero
        for c in range(C):                    # static unroll; C is tiny
            xr = x_ref[c, pl.ds(r0, chunk), :].astype(jnp.float32)
            yr = y_ref[c, pl.ds(r0, chunk), :].astype(jnp.float32)
            run = run + (yr - xr)
            if dist_r == 2:
                acc = acc + run * run
            else:                             # matches torch: any r != 2 -> L1
                acc = acc + jnp.abs(run)
            y_sq = y_sq + yr * yr
            if use_l1loss:
                x_ws = x_ws + xr * float(c + 1)
                y_ws = y_ws + yr * float(c + 1)

        if dist_r == 2:
            samplewise = jnp.sqrt(acc * inv_c)
        else:
            samplewise = acc * inv_c
        per = samplewise * (1.0 - y_sq + coff_const)
        if use_l1loss:
            x_mean = x_ws * inv_c
            y_mean = y_ws * inv_c
            per = per + (x_mean - y_mean) ** 2 * (1.0 - jnp.abs(y_mean - 0.5))
        # Zero-padded batch lanes contribute exactly 0, so no mask is needed.
        return psum + per

    psum = lax.fori_loop(0, n_chunks, chunk_body,
                         jnp.zeros((chunk, L), jnp.float32), unroll=unroll)

    if chunk == out_ref.shape[0]:
        out_ref[...] = psum                   # single unmasked (8,128) vst
    else:                                     # tiny single-tile case (R < 8)
        out_ref[...] = jnp.zeros_like(out_ref)
        out_ref[0:chunk, :] = psum


def emd_loss(x, y_true, *, dist_r=2, use_l1loss=False, l1loss_coef=0.0,
             inputs_transposed=False):
    """Pallas TPU emd_loss forward.  Returns a scalar float32.

    x / y_true: (B, C) score distributions, or (C, B) if inputs_transposed
    (supplying the transposed layout upstream skips the wrapper-side copy).
    Note: the PyTorch forward shadows self.l1loss_coef with a locally computed
    coefficient, so the constructor argument never affects the loss; we mirror
    that (argument kept for API parity, unused).
    """
    del l1loss_coef
    assert x.ndim == 2 and y_true.ndim == 2
    assert x.shape == y_true.shape
    if inputs_transposed:
        C, B = x.shape
    else:
        B, C = x.shape
    assert B > 0
    coff_const = 0.2 if C == 5 else 0.1

    # --- batch tiling ----------------------------------------------------
    unit = _CHUNK * _LANES                     # 1024: keeps R a multiple of 8
    if B <= unit:                              # single small tile
        TB = ((B + _LANES - 1) // _LANES) * _LANES
        n_tiles = 1
    else:
        # >= 2 grid steps for mid-size batches (both v7x TensorCores), capped
        # at 32768 lanes/tile (amortizes the ~0.35us/step overhead on the
        # single-TC v5e/v6e while double-buffered inputs stay ~5 MB, well
        # under every generation's scoped-VMEM default).
        half = -(-B // 2)
        TB = min(32768, ((half + unit - 1) // unit) * unit)
        n_tiles = -(-B // TB)
    B_pad = n_tiles * TB
    R = TB // _LANES
    chunk = min(_CHUNK, R)
    n_chunks = R // chunk
    if n_chunks <= 8:
        unroll = True
    else:
        unroll = next(u for u in (8, 4, 2, 1) if n_chunks % u == 0)

    def _prep(a):                  # -> lane-dense (C, B_pad//128, 128)
        a_t = a if inputs_transposed else jnp.swapaxes(a, 0, 1)
        if B_pad != B:
            a_t = jnp.pad(a_t, ((0, 0), (0, B_pad - B)))
        return a_t.reshape(C, n_tiles * R, _LANES)   # free row-major reshape

    kernel = functools.partial(
        _emd_loss_kernel, dist_r=dist_r, use_l1loss=use_l1loss,
        coff_const=coff_const, chunk=chunk, n_chunks=n_chunks, unroll=unroll)

    partials = pl.pallas_call(
        kernel,
        out_shape=jax.ShapeDtypeStruct((n_tiles * 8, _LANES), jnp.float32),
        grid_spec=pltpu.PrefetchScalarGridSpec(
            num_scalar_prefetch=0,
            grid=(n_tiles,),
            in_specs=[
                pl.BlockSpec((C, R, _LANES), lambda i: (0, i, 0)),
                pl.BlockSpec((C, R, _LANES), lambda i: (0, i, 0)),
            ],
            out_specs=pl.BlockSpec((8, _LANES), lambda i: (i, 0)),
        ),
        compiler_params=pltpu.CompilerParams(
            dimension_semantics=("parallel",)),
    )(_prep(x), _prep(y_true))

    return jnp.sum(partials) / B


def _emd_loss_ref(x, y_true, *, dist_r=2, use_l1loss=False):
    """Pure-JAX reference mirroring the PyTorch forward."""
    C = y_true.shape[1]
    coff = 1.0 - jnp.sum(y_true ** 2, axis=-1) + (0.2 if C == 5 else 0.1)
    cdf_x = jnp.cumsum(x, axis=-1)
    cdf_y = jnp.cumsum(y_true, axis=-1)
    if dist_r == 2:
        sw = jnp.sqrt(jnp.mean((cdf_y - cdf_x) ** 2, axis=-1))
    else:
        sw = jnp.mean(jnp.abs(cdf_y - cdf_x), axis=-1)
    loss = jnp.mean(sw * coff)
    if use_l1loss:
        rate = jnp.arange(1, x.shape[1] + 1, dtype=jnp.float32)
        x_mean = jnp.mean(x * rate, axis=-1)
        y_mean = jnp.mean(y_true * rate, axis=-1)
        loss = loss + jnp.mean((x_mean - y_mean) ** 2 *
                               (1.0 - jnp.abs(y_mean - 0.5)))
    return loss


if __name__ == "__main__":
    key = jax.random.PRNGKey(0)
    kx, ky, kx2, ky2, kx3, ky3 = jax.random.split(key, 6)

    # Small AVA-style case: B=8 samples, C=10 score bins.
    B, C = 8, 10
    x = jax.nn.softmax(jax.random.normal(kx, (B, C), jnp.float32), axis=-1)
    y = jax.nn.softmax(jax.random.normal(ky, (B, C), jnp.float32), axis=-1)
    for kw in (dict(dist_r=2, use_l1loss=False),
               dict(dist_r=1, use_l1loss=False),
               dict(dist_r=2, use_l1loss=True)):
        out = emd_loss(x, y, **kw)
        jax.block_until_ready(out)
        ref = _emd_loss_ref(x, y, **kw)
        assert jnp.allclose(out, ref, atol=1e-5, rtol=1e-5), (kw, out, ref)

    # C=5 branch (coff constant 0.2).
    x5 = jax.nn.softmax(jax.random.normal(kx3, (B, 5), jnp.float32), axis=-1)
    y5 = jax.nn.softmax(jax.random.normal(ky3, (B, 5), jnp.float32), axis=-1)
    out5 = emd_loss(x5, y5, dist_r=2, use_l1loss=True)
    jax.block_until_ready(out5)
    ref5 = _emd_loss_ref(x5, y5, dist_r=2, use_l1loss=True)
    assert jnp.allclose(out5, ref5, atol=1e-5, rtol=1e-5), (out5, ref5)

    # Mid-size, non-multiple-of-tile batch: exercises the 2-tile "parallel"
    # grid, zero padding, the chunked inner loop, and the copy-free
    # pre-transposed input path.
    B2 = 2500
    x2 = jax.nn.softmax(jax.random.normal(kx2, (B2, C), jnp.float32), axis=-1)
    y2 = jax.nn.softmax(jax.random.normal(ky2, (B2, C), jnp.float32), axis=-1)
    out2 = emd_loss(x2, y2, dist_r=2, use_l1loss=True)
    out2t = emd_loss(jnp.swapaxes(x2, 0, 1), jnp.swapaxes(y2, 0, 1),
                     dist_r=2, use_l1loss=True, inputs_transposed=True)
    jax.block_until_ready((out2, out2t))
    ref2 = _emd_loss_ref(x2, y2, dist_r=2, use_l1loss=True)
    assert jnp.allclose(out2, ref2, atol=1e-5, rtol=1e-5), (out2, ref2)
    assert jnp.allclose(out2t, ref2, atol=1e-5, rtol=1e-5), (out2t, ref2)

    print("KERNEL_OK")
</pallas_src>

<mosaic_0001>
module attributes {stable_mosaic.version = 11 : i64} {
  func.func @_emd_loss_kernel(%arg0: i32, %arg1: memref<10x1x128xf32, #tpu.memory_space<vmem>>, %arg2: memref<10x1x128xf32, #tpu.memory_space<vmem>>, %arg3: memref<8x128xf32, #tpu.memory_space<vmem>>) attributes {dimension_semantics = [#tpu.dimension_semantics<parallel>], iteration_bounds = array<i64: 1>, scalar_prefetch = 0 : i64, scratch_operands = 0 : i64, tpu.core_type = #tpu.core_type<tc>, window_params = [{transform_indices = @transform_0, window_bounds = array<i64: 10, 1, 128>}, {transform_indices = @transform_1, window_bounds = array<i64: 10, 1, 128>}, {transform_indices = @transform_2, window_bounds = array<i64: 8, 128>}]} {
    %cst = arith.constant 0.000000e+00 : f32
    %0 = vector.broadcast %cst : f32 to vector<1x128xf32>
    %c0_i32 = arith.constant 0 : i32
    %c1_i32 = arith.constant 1 : i32
    %1 = arith.muli %c0_i32, %c1_i32 : i32
    %2 = tpu.assume_multiple %1, 1 : i32
    %cst_0 = arith.constant 0.000000e+00 : f32
    %3 = vector.broadcast %cst_0 : f32 to vector<1x128xf32>
    %c0 = arith.constant 0 : index
    %4 = arith.index_cast %2 : i32 to index
    %c0_1 = arith.constant 0 : index
    %5 = vector.load %arg1[%c0, %4, %c0_1] : memref<10x1x128xf32, #tpu.memory_space<vmem>>, vector<1x1x128xf32>
    %6 = vector.shape_cast %5 : vector<1x1x128xf32> to vector<1x128xf32>
    %c0_2 = arith.constant 0 : index
    %7 = arith.index_cast %2 : i32 to index
    %c0_3 = arith.constant 0 : index
    %8 = vector.load %arg2[%c0_2, %7, %c0_3] : memref<10x1x128xf32, #tpu.memory_space<vmem>>, vector<1x1x128xf32>
    %9 = vector.shape_cast %8 : vector<1x1x128xf32> to vector<1x128xf32>
    %10 = arith.subf %9, %6 : vector<1x128xf32>
    %11 = arith.addf %3, %10 : vector<1x128xf32>
    %12 = arith.mulf %11, %11 : vector<1x128xf32>
    %13 = arith.addf %3, %12 : vector<1x128xf32>
    %14 = arith.mulf %9, %9 : vector<1x128xf32>
    %15 = arith.addf %3, %14 : vector<1x128xf32>
    %c1 = arith.constant 1 : index
    %16 = arith.index_cast %2 : i32 to index
    %c0_4 = arith.constant 0 : index
    %17 = vector.load %arg1[%c1, %16, %c0_4] : memref<10x1x128xf32, #tpu.memory_space<vmem>>, vector<1x1x128xf32>
    %18 = vector.shape_cast %17 : vector<1x1x128xf32> to vector<1x128xf32>
    %c1_5 = arith.constant 1 : index
    %19 = arith.index_cast %2 : i32 to index
    %c0_6 = arith.constant 0 : index
    %20 = vector.load %arg2[%c1_5, %19, %c0_6] : memref<10x1x128xf32, #tpu.memory_space<vmem>>, vector<1x1x128xf32>
    %21 = vector.shape_cast %20 : vector<1x1x128xf32> to vector<1x128xf32>
    %22 = arith.subf %21, %18 : vector<1x128xf32>
    %23 = arith.addf %11, %22 : vector<1x128xf32>
    %24 = arith.mulf %23, %23 : vector<1x128xf32>
    %25 = arith.addf %13, %24 : vector<1x128xf32>
    %26 = arith.mulf %21, %21 : vector<1x128xf32>
    %27 = arith.addf %15, %26 : vector<1x128xf32>
    %c2 = arith.constant 2 : index
    %28 = arith.index_cast %2 : i32 to index
    %c0_7 = arith.constant 0 : index
    %29 = vector.load %arg1[%c2, %28, %c0_7] : memref<10x1x128xf32, #tpu.memory_space<vmem>>, vector<1x1x128xf32>
    %30 = vector.shape_cast %29 : vector<1x1x128xf32> to vector<1x128xf32>
    %c2_8 = arith.constant 2 : index
    %31 = arith.index_cast %2 : i32 to index
    %c0_9 = arith.constant 0 : index
    %32 = vector.load %arg2[%c2_8, %31, %c0_9] : memref<10x1x128xf32, #tpu.memory_space<vmem>>, vector<1x1x128xf32>
    %33 = vector.shape_cast %32 : vector<1x1x128xf32> to vector<1x128xf32>
    %34 = arith.subf %33, %30 : vector<1x128xf32>
    %35 = arith.addf %23, %34 : vector<1x128xf32>
    %36 = arith.mulf %35, %35 : vector<1x128xf32>
    %37 = arith.addf %25, %36 : vector<1x128xf32>
    %38 = arith.mulf %33, %33 : vector<1x128xf32>
    %39 = arith.addf %27, %38 : vector<1x128xf32>
    %c3 = arith.constant 3 : index
    %40 = arith.index_cast %2 : i32 to index
    %c0_10 = arith.constant 0 : index
    %41 = vector.load %arg1[%c3, %40, %c0_10] : memref<10x1x128xf32, #tpu.memory_space<vmem>>, vector<1x1x128xf32>
    %42 = vector.shape_cast %41 : vector<1x1x128xf32> to vector<1x128xf32>
    %c3_11 = arith.constant 3 : index
    %43 = arith.index_cast %2 : i32 to index
    %c0_12 = arith.constant 0 : index
    %44 = vector.load %arg2[%c3_11, %43, %c0_12] : memref<10x1x128xf32, #tpu.memory_space<vmem>>, vector<1x1x128xf32>
    %45 = vector.shape_cast %44 : vector<1x1x128xf32> to vector<1x128xf32>
    %46 = arith.subf %45, %42 : vector<1x128xf32>
    %47 = arith.addf %35, %46 : vector<1x128xf32>
    %48 = arith.mulf %47, %47 : vector<1x128xf32>
    %49 = arith.addf %37, %48 : vector<1x128xf32>
    %50 = arith.mulf %45, %45 : vector<1x128xf32>
    %51 = arith.addf %39, %50 : vector<1x128xf32>
    %c4 = arith.constant 4 : index
    %52 = arith.index_cast %2 : i32 to index
    %c0_13 = arith.constant 0 : index
    %53 = vector.load %arg1[%c4, %52, %c0_13] : memref<10x1x128xf32, #tpu.memory_space<vmem>>, vector<1x1x128xf32>
    %54 = vector.shape_cast %53 : vector<1x1x128xf32> to vector<1x128xf32>
    %c4_14 = arith.constant 4 : index
    %55 = arith.index_cast %2 : i32 to index
    %c0_15 = arith.constant 0 : index
    %56 = vector.load %arg2[%c4_14, %55, %c0_15] : memref<10x1x128xf32, #tpu.memory_space<vmem>>, vector<1x1x128xf32>
    %57 = vector.shape_cast %56 : vector<1x1x128xf32> to vector<1x128xf32>
    %58 = arith.subf %57, %54 : vector<1x128xf32>
    %59 = arith.addf %47, %58 : vector<1x128xf32>
    %60 = arith.mulf %59, %59 : vector<1x128xf32>
    %61 = arith.addf %49, %60 : vector<1x128xf32>
    %62 = arith.mulf %57, %57 : vector<1x128xf32>
    %63 = arith.addf %51, %62 : vector<1x128xf32>
    %c5 = arith.constant 5 : index
    %64 = arith.index_cast %2 : i32 to index
    %c0_16 = arith.constant 0 : index
    %65 = vector.load %arg1[%c5, %64, %c0_16] : memref<10x1x128xf32, #tpu.memory_space<vmem>>, vector<1x1x128xf32>
    %66 = vector.shape_cast %65 : vector<1x1x128xf32> to vector<1x128xf32>
    %c5_17 = arith.constant 5 : index
    %67 = arith.index_cast %2 : i32 to index
    %c0_18 = arith.constant 0 : index
    %68 = vector.load %arg2[%c5_17, %67, %c0_18] : memref<10x1x128xf32, #tpu.memory_space<vmem>>, vector<1x1x128xf32>
    %69 = vector.shape_cast %68 : vector<1x1x128xf32> to vector<1x128xf32>
    %70 = arith.subf %69, %66 : vector<1x128xf32>
    %71 = arith.addf %59, %70 : vector<1x128xf32>
    %72 = arith.mulf %71, %71 : vector<1x128xf32>
    %73 = arith.addf %61, %72 : vector<1x128xf32>
    %74 = arith.mulf %69, %69 : vector<1x128xf32>
    %75 = arith.addf %63, %74 : vector<1x128xf32>
    %c6 = arith.constant 6 : index
    %76 = arith.index_cast %2 : i32 to index
    %c0_19 = arith.constant 0 : index
    %77 = vector.load %arg1[%c6, %76, %c0_19] : memref<10x1x128xf32, #tpu.memory_space<vmem>>, vector<1x1x128xf32>
    %78 = vector.shape_cast %77 : vector<1x1x128xf32> to vector<1x128xf32>
    %c6_20 = arith.constant 6 : index
    %79 = arith.index_cast %2 : i32 to index
    %c0_21 = arith.constant 0 : index
    %80 = vector.load %arg2[%c6_20, %79, %c0_21] : memref<10x1x128xf32, #tpu.memory_space<vmem>>, vector<1x1x128xf32>
    %81 = vector.shape_cast %80 : vector<1x1x128xf32> to vector<1x128xf32>
    %82 = arith.subf %81, %78 : vector<1x128xf32>
    %83 = arith.addf %71, %82 : vector<1x128xf32>
    %84 = arith.mulf %83, %83 : vector<1x128xf32>
    %85 = arith.addf %73, %84 : vector<1x128xf32>
    %86 = arith.mulf %81, %81 : vector<1x128xf32>
    %87 = arith.addf %75, %86 : vector<1x128xf32>
    %c7 = arith.constant 7 : index
    %88 = arith.index_cast %2 : i32 to index
    %c0_22 = arith.constant 0 : index
    %89 = vector.load %arg1[%c7, %88, %c0_22] : memref<10x1x128xf32, #tpu.memory_space<vmem>>, vector<1x1x128xf32>
    %90 = vector.shape_cast %89 : vector<1x1x128xf32> to vector<1x128xf32>
    %c7_23 = arith.constant 7 : index
    %91 = arith.index_cast %2 : i32 to index
    %c0_24 = arith.constant 0 : index
    %92 = vector.load %arg2[%c7_23, %91, %c0_24] : memref<10x1x128xf32, #tpu.memory_space<vmem>>, vector<1x1x128xf32>
    %93 = vector.shape_cast %92 : vector<1x1x128xf32> to vector<1x128xf32>
    %94 = arith.subf %93, %90 : vector<1x128xf32>
    %95 = arith.addf %83, %94 : vector<1x128xf32>
    %96 = arith.mulf %95, %95 : vector<1x128xf32>
    %97 = arith.addf %85, %96 : vector<1x128xf32>
    %98 = arith.mulf %93, %93 : vector<1x128xf32>
    %99 = arith.addf %87, %98 : vector<1x128xf32>
    %c8 = arith.constant 8 : index
    %100 = arith.index_cast %2 : i32 to index
    %c0_25 = arith.constant 0 : index
    %101 = vector.load %arg1[%c8, %100, %c0_25] : memref<10x1x128xf32, #tpu.memory_space<vmem>>, vector<1x1x128xf32>
    %102 = vector.shape_cast %101 : vector<1x1x128xf32> to vector<1x128xf32>
    %c8_26 = arith.constant 8 : index
    %103 = arith.index_cast %2 : i32 to index
    %c0_27 = arith.constant 0 : index
    %104 = vector.load %arg2[%c8_26, %103, %c0_27] : memref<10x1x128xf32, #tpu.memory_space<vmem>>, vector<1x1x128xf32>
    %105 = vector.shape_cast %104 : vector<1x1x128xf32> to vector<1x128xf32>
    %106 = arith.subf %105, %102 : vector<1x128xf32>
    %107 = arith.addf %95, %106 : vector<1x128xf32>
    %108 = arith.mulf %107, %107 : vector<1x128xf32>
    %109 = arith.addf %97, %108 : vector<1x128xf32>
    %110 = arith.mulf %105, %105 : vector<1x128xf32>
    %111 = arith.addf %99, %110 : vector<1x128xf32>
    %c9 = arith.constant 9 : index
    %112 = arith.index_cast %2 : i32 to index
    %c0_28 = arith.constant 0 : index
    %113 = vector.load %arg1[%c9, %112, %c0_28] : memref<10x1x128xf32, #tpu.memory_space<vmem>>, vector<1x1x128xf32>
    %114 = vector.shape_cast %113 : vector<1x1x128xf32> to vector<1x128xf32>
    %c9_29 = arith.constant 9 : index
    %115 = arith.index_cast %2 : i32 to index
    %c0_30 = arith.constant 0 : index
    %116 = vector.load %arg2[%c9_29, %115, %c0_30] : memref<10x1x128xf32, #tpu.memory_space<vmem>>, vector<1x1x128xf32>
    %117 = vector.shape_cast %116 : vector<1x1x128xf32> to vector<1x128xf32>
    %118 = arith.subf %117, %114 : vector<1x128xf32>
    %119 = arith.addf %107, %118 : vector<1x128xf32>
    %120 = arith.mulf %119, %119 : vector<1x128xf32>
    %121 = arith.addf %109, %120 : vector<1x128xf32>
    %122 = arith.mulf %117, %117 : vector<1x128xf32>
    %123 = arith.addf %111, %122 : vector<1x128xf32>
    %cst_31 = arith.constant 1.000000e-01 : f32
    %124 = vector.broadcast %cst_31 : f32 to vector<1x128xf32>
    %125 = arith.mulf %121, %124 : vector<1x128xf32>
    %126 = math.sqrt %125 : vector<1x128xf32>
    %cst_32 = arith.constant 1.000000e+00 : f32
    %127 = vector.broadcast %cst_32 : f32 to vector<1x128xf32>
    %128 = arith.subf %127, %123 : vector<1x128xf32>
    %cst_33 = arith.constant 1.000000e-01 : f32
    %129 = vector.broadcast %cst_33 : f32 to vector<1x128xf32>
    %130 = arith.addf %128, %129 : vector<1x128xf32>
    %131 = arith.mulf %126, %130 : vector<1x128xf32>
    %132 = arith.addf %0, %131 : vector<1x128xf32>
    %c1_i32_34 = arith.constant 1 : i32
    %cst_35 = arith.constant 0.000000e+00 : f32
    %133 = vector.broadcast %cst_35 : f32 to vector<8x128xf32>
    %c0_36 = arith.constant 0 : index
    %c0_37 = arith.constant 0 : index
    %134 = vector.load %arg3[%c0_36, %c0_37] : memref<8x128xf32, #tpu.memory_space<vmem>>, vector<8x128xf32>
    tpu.vector_store %arg3[%c0_36, %c0_37], %133 {strides = array<i32>} : memref<8x128xf32, #tpu.memory_space<vmem>>, vector<8x128xf32>,
    %c0_38 = arith.constant 0 : index
    %c0_39 = arith.constant 0 : index
    %135 = vector.load %arg3[%c0_38, %c0_39] : memref<8x128xf32, #tpu.memory_space<vmem>>, vector<1x128xf32>
    tpu.vector_store %arg3[%c0_38, %c0_39], %132 {strides = array<i32>} : memref<8x128xf32, #tpu.memory_space<vmem>>, vector<1x128xf32>,
    return
  }
  func.func @transform_0(%arg0: i32) -> (i32, i32, i32) {
    %c0_i32 = arith.constant 0 : i32
    %c0_i32_0 = arith.constant 0 : i32
    %c0_i32_1 = arith.constant 0 : i32
    return %c0_i32, %arg0, %c0_i32_0 : i32, i32, i32
  }
  func.func @transform_1(%arg0: i32) -> (i32, i32, i32) {
    %c0_i32 = arith.constant 0 : i32
    %c0_i32_0 = arith.constant 0 : i32
    %c0_i32_1 = arith.constant 0 : i32
    return %c0_i32, %arg0, %c0_i32_0 : i32, i32, i32
  }
  func.func @transform_2(%arg0: i32) -> (i32, i32) {
    %c0_i32 = arith.constant 0 : i32
    %c0_i32_0 = arith.constant 0 : i32
    return %arg0, %c0_i32 : i32, i32
  }
}

</mosaic_0001>

<bundles_post_ra>
// kernel: tpu_custom_call.1
= control target key start
LH: loop header
LB: loop body
LE: loop exit
PB: predicated region body
PF: predicated region fallthrough
CT: control target
= control target key end

     0   :  { %7 = vsyncpa [#allocation3], 0  ;;  %s322_s0 = inlined_call_operand.hbm [shape: f32[10,1,128], index: 0, kind: input, shape index: {}]   ;;  %s323_s1 = inlined_call_operand.hbm [shape: f32[10,1,128], index: 1, kind: input, shape index: {}]   ;;  %s324_s2 = inlined_call_operand.hbm [shape: f32[8,128], index: 2, kind: output, shape index: {}]  }
   0x1   :  { %8 = vsyncpa [#allocation6], 0 }
   0x2   :  { %9 = vsyncpa [#allocation4], 0  ;;  %s14_s11 = sshll.u32 %s322_s0, 4  ;;  %s292_s12 = smov [#allocation2]   ;;  %s15_s11 = int_to_ptr.hbm [resolvable:$true] %s14_s11 }
   0x3   :  { %s16_s13 = sshll.u32 %s292_s12, 4  ;;  %s27_s16 = sshll.u32 %s323_s1, 4  ;;  %s17_s13 = int_to_ptr.vmem [resolvable:$true] %s16_s13  ;;  %s28_s16 = int_to_ptr.hbm [resolvable:$true] %s27_s16 }
   0x4   :  { %s293_s17 = smov 16   ;;  %s294_s18 = smov 1  }
   0x5   :  { %22 = dma.hbm_to_vmem [thread:$0]  %s15_s11, 160, %s17_s13, [#allocation3], %s293_s17, %s293_s17, %s294_s18  }
   0x6   :  { %s295_s19 = smov [#allocation5]  }
   0x7   :  { %s29_s20 = sshll.u32 %s295_s19, 4  ;;  %s30_s20 = int_to_ptr.vmem [resolvable:$true] %s29_s20 }
   0x8   :  { %35 = dma.hbm_to_vmem [thread:$0]  %s28_s16, 160, %s30_s20, [#allocation6], %s293_s17, %s293_s17, %s294_s18  }
   0x9   :  { %286 = dma.done.wait [#allocation3], 160  }
   0xa   :  { %287 = vsyncadd [#allocation3], 4294967136 }
   0xb   :  { %288 = dma.done.wait [#allocation6], 160  }
   0xc   :  { %289 = vsyncadd [#allocation6], 4294967136  ;;  %v296_v0 = vmov 0.0   ;;  %v44_v1 = vld [vmem:[#allocation2] sm:$0x1]  ;;  %s297_s0 = smov [#allocation7]  }
   0xd   :  { %168 = vst [vmem:[#allocation7] sm:$0xff] %v296_v0  ;;  %v45_v2 = vld [vmem:[#allocation5] sm:$0x1]  ;;  %v54_v3 = vld [vmem:[#allocation2 + $0x1] sm:$0x1]  ;;  %s175_s1 = sshll.u32 %s297_s0, 4  ;;  %s176_s1 = int_to_ptr.vmem [resolvable:$true] %s175_s1 }
   0xe   :  { %v46_v4 = vsub.f32 %v45_v2, %v44_v1  ;;  %v50_v5 = vmul.f32 %v45_v2, %v45_v2  ;;  %v56_v6 = vld [vmem:[#allocation5 + $0x1] sm:$0x1]  ;;  %v65_v7 = vld [vmem:[#allocation2 + $0x2] sm:$0x1]  ;;  %v67_v8 = vld [vmem:[#allocation5 + $0x2] sm:$0x1] }
   0xf   :  { %v57_v9 = vsub.f32 %v56_v6, %v54_v3  ;;  %v61_v10 = vmul.f32 %v56_v6, %v56_v6  ;;  %v68_v11 = vsub.f32 %v67_v8, %v65_v7  ;;  %v76_v12 = vld [vmem:[#allocation2 + $0x3] sm:$0x1]  ;;  %v78_v13 = vld [vmem:[#allocation5 + $0x3] sm:$0x1]  ;;  %v87_v14 = vld [vmem:[#allocation2 + $0x4] sm:$0x1]  ;;  %v72_v20 = vmul.f32 %v67_v8, %v67_v8 }
  0x10   :  { %v89_v15 = vld [vmem:[#allocation5 + $0x4] sm:$0x1]  ;;  %v48_v16 = vmul.f32 %v46_v4, %v46_v4  ;;  %v79_v18 = vsub.f32 %v78_v13, %v76_v12  ;;  %v98_v21 = vld [vmem:[#allocation2 + $0x5] sm:$0x1]  ;;  %v100_v22 = vld [vmem:[#allocation5 + $0x5] sm:$0x1]  ;;  %v83_v33 = vmul.f32 %v78_v13, %v78_v13 }
  0x11   :  { %v58_v17 = vadd.f32 %v57_v9, %v46_v4  ;;  %v62_v19 = vadd.f32 %v61_v10, %v50_v5  ;;  %v90_v25 = vsub.f32 %v89_v15, %v87_v14  ;;  %v109_v26 = vld [vmem:[#allocation2 + $0x6] sm:$0x1]  ;;  %v111_v27 = vld [vmem:[#allocation5 + $0x6] sm:$0x1]  ;;  %v101_v31 = vsub.f32 %v100_v22, %v98_v21  ;;  %v120_v34 = vld [vmem:[#allocation2 + $0x7] sm:$0x1] }
  0x12   :  { %v122_v35 = vld [vmem:[#allocation5 + $0x7] sm:$0x1]  ;;  %v112_v39 = vsub.f32 %v111_v27, %v109_v26  ;;  %v131_v40 = vld [vmem:[#allocation2 + $0x8] sm:$0x1]  ;;  %v133_v41 = vld [vmem:[#allocation5 + $0x8] sm:$0x1]  ;;  %v94_v47 = vmul.f32 %v89_v15, %v89_v15  ;;  %v105_v59 = vmul.f32 %v100_v22, %v100_v22  ;;  %v116_v3 = vmul.f32 %v111_v27, %v111_v27 }
  0x13   :  { %v59_v23 = vmul.f32 %v58_v17, %v58_v17  ;;  %v69_v24 = vadd.f32 %v68_v11, %v58_v17  ;;  %v73_v32 = vadd.f32 %v72_v20, %v62_v19  ;;  %v123_v45 = vsub.f32 %v122_v35, %v120_v34  ;;  %v142_v48 = vld [vmem:[#allocation2 + $0x9] sm:$0x1]  ;;  %v144_v49 = vld [vmem:[#allocation5 + $0x9] sm:$0x1]  ;;  %s177_s23 = sshll.u32 %s324_s2, 4  ;;  %s178_s23 = int_to_ptr.hbm [resolvable:$true] %s177_s23 }
  0x14   :  { %v134_v53 = vsub.f32 %v133_v41, %v131_v40  ;;  %v145_v57 = vsub.f32 %v144_v49, %v142_v48  ;;  %v127_v8 = vmul.f32 %v122_v35, %v122_v35  ;;  %v138_v11 = vmul.f32 %v133_v41, %v133_v41 }
  0x15   :  { %v60_v28 = vadd.f32 %v59_v23, %v48_v16  ;;  %v70_v29 = vmul.f32 %v69_v24, %v69_v24  ;;  %v80_v30 = vadd.f32 %v79_v18, %v69_v24  ;;  %v84_v46 = vadd.f32 %v83_v33, %v73_v32 }
  0x16   :  { %v149_v13 = vmul.f32 %v144_v49, %v144_v49 }
  0x17   :  { %v71_v36 = vadd.f32 %v70_v29, %v60_v28  ;;  %v81_v37 = vmul.f32 %v80_v30, %v80_v30  ;;  %v91_v38 = vadd.f32 %v90_v25, %v80_v30  ;;  %v95_v58 = vadd.f32 %v94_v47, %v84_v46 }
  0x19   :  { %v82_v42 = vadd.f32 %v81_v37, %v71_v36  ;;  %v92_v43 = vmul.f32 %v91_v38, %v91_v38  ;;  %v102_v44 = vadd.f32 %v101_v31, %v91_v38  ;;  %v106_v2 = vadd.f32 %v105_v59, %v95_v58 }
  0x1b   :  { %v93_v50 = vadd.f32 %v92_v43, %v82_v42  ;;  %v103_v51 = vmul.f32 %v102_v44, %v102_v44  ;;  %v113_v52 = vadd.f32 %v112_v39, %v102_v44  ;;  %v117_v7 = vadd.f32 %v116_v3, %v106_v2 }
  0x1d   :  { %v104_v54 = vadd.f32 %v103_v51, %v93_v50  ;;  %v114_v55 = vmul.f32 %v113_v52, %v113_v52  ;;  %v124_v56 = vadd.f32 %v123_v45, %v113_v52  ;;  %v128_v10 = vadd.f32 %v127_v8, %v117_v7 }
  0x1f   :  { %v115_v60 = vadd.f32 %v114_v55, %v104_v54  ;;  %v125_v61 = vmul.f32 %v124_v56, %v124_v56  ;;  %v135_v62 = vadd.f32 %v134_v53, %v124_v56  ;;  %v139_v12 = vadd.f32 %v138_v11, %v128_v10 }
  0x21   :  { %v126_v63 = vadd.f32 %v125_v61, %v115_v60  ;;  %v136_v0 = vmul.f32 %v135_v62, %v135_v62  ;;  %v146_v1 = vadd.f32 %v145_v57, %v135_v62  ;;  %v150_v16 = vadd.f32 %v149_v13, %v139_v12 }
  0x23   :  { %v137_v4 = vadd.f32 %v136_v0, %v126_v63  ;;  %v147_v5 = vmul.f32 %v146_v1, %v146_v1  ;;  %v164_v20 = vsub.f32 1.0, %v150_v16 }
  0x25   :  { %v148_v6 = vadd.f32 %v147_v5, %v137_v4  ;;  %v165_v24 = vadd.f32 0.1, %v164_v20 }
  0x27   :  { %v151_v9 = vmul.f32 0.1, %v148_v6 }
  0x29   :  { %212 = vrsqrt.f32 %v151_v9  ;;  %vm159_vm0 = vcmp.eq.f32.partialorder %v151_v9, inf  ;;  %v162_v22 = vand.u32 2147483648, %v151_v9  ;;  %vm161_vm1 = vcmp.eq.f32.partialorder %v151_v9, 0.0 }
  0x2f   :  { %v213_v14 = vpop.eup %212 }
  0x30   :  { %v153_v15 = vmul.f32 %v213_v14, %v151_v9 }
  0x32   :  { %v154_v17 = vmul.f32 %v213_v14, %v153_v15 }
  0x34   :  { %v155_v18 = vmul.f32 0.5, %v154_v17 }
  0x36   :  { %v156_v19 = vsub.f32 1.5, %v155_v18 }
  0x38   :  { %v157_v21 = vmul.f32 %v213_v14, %v156_v19 }
  0x3a   :  { %v158_v23 = vmul.f32 %v157_v21, %v151_v9 }
  0x3c   :  { %v160_v25 = vsel %vm159_vm0, %v151_v9, %v158_v23 }
  0x3d   :  { %v163_v26 = vsel %vm161_vm1, %v162_v22, %v160_v25 }
  0x3e   :  { %v166_v27 = vmul.f32 %v165_v24, %v163_v26 }
  0x40   :  { %169 = vst [vmem:[#allocation7] sm:$0x1] %v166_v27 }
  0x41   :  { %180 = dma.vmem_to_hbm [thread:$0]  %s176_s1, 128, %s178_s23, [#allocation4]  }
  0x42   :  { %290 = dma.done.wait [#allocation4], 128  }
  0x43   :  { %291 = vsyncadd [#allocation4], 4294967168 }
  0x44   :  { %185 = vsyncpa [#allocation3], 1 }
  0x45   :  { %186 = vsyncpa [#allocation6], 1 }
  0x46   :  { %187 = vsyncpa [#allocation4], 1 }

</bundles_post_ra>
